<compile_context>
chip_gen: v7x
topology: tpu7x:2x2x1
jax: 0.10.0
libtpu: 0.0.40
codegen_flags: <defaults>
</compile_context>

<pallas_src>
import functools

import jax
import jax.numpy as jnp
from jax import lax
from jax.experimental import pallas as pl
from jax.experimental.pallas import tpu as pltpu


def _drop_stripes_kernel(starts_ref, ends_ref, x_ref, o_ref, *, stripes_num, l_blk):
    # starts_ref / ends_ref: (B * stripes_num,) int32 in SMEM (scalar prefetch),
    #   stripe ranges expressed in *flattened lane* coordinates [start, end).
    # x_ref / o_ref: (1, R_blk, L_blk) VMEM tile.
    n = pl.program_id(0)          # batch index
    lt = pl.program_id(2)         # lane-tile index

    x = x_ref[...]

    # Global lane index, 1-D along the dropped (lane) axis only.
    lane = lt * l_blk + lax.broadcasted_iota(jnp.int32, (1, 1, l_blk), 2)

    # OR all stripes into one small 1-D drop mask.
    drop = jnp.zeros((1, 1, l_blk), dtype=jnp.bool_)
    for s in range(stripes_num):  # stripes_num is small & static -> unrolled
        b = starts_ref[n * stripes_num + s]
        e = ends_ref[n * stripes_num + s]
        drop = drop | ((lane >= b) & (lane < e))

    # Single broadcasting select per element.
    o_ref[...] = jnp.where(jnp.logical_not(drop), x, jnp.zeros((), x.dtype))


def drop_stripes(x, bgn, dist, *, dim, stripes_num, training=True):
    """Pallas implementation of DropStripes.forward.

    x:    (B, C, H, W)
    bgn:  (B, stripes_num) int32, stripe start positions along `dim`
    dist: (B, stripes_num) int32, stripe widths
    """
    assert x.ndim == 4
    assert dim in (2, 3)
    if not training:
        return x

    B, C, H, W = x.shape

    if dim == 2:
        # Drop along H: flatten (H, W) into the lane dim so stores are
        # lane-dense even for small W.  Stripe [bgn, bgn+dist) over H becomes
        # the contiguous flattened range [bgn*W, (bgn+dist)*W).
        R, L, scale = C, H * W, W
    else:
        # Drop along W: W is already the lane dim; fold C*H into sublanes.
        R, L, scale = C * H, W, 1

    x2 = x.reshape(B, R, L)
    starts = (bgn.astype(jnp.int32) * scale).reshape(-1)
    ends = ((bgn + dist).astype(jnp.int32) * scale).reshape(-1)

    # Block sizes: lane dim a multiple of 128 (or the full dim), sublane dim a
    # multiple of 8 (or the full dim); cap per-block footprint at ~2 MiB f32.
    l_blk = min(L, 2048) if (L % 128 == 0) else L
    r_blk = min(R, 256) if (R % 8 == 0) else R
    grid = (B, pl.cdiv(R, r_blk), pl.cdiv(L, l_blk))

    kernel = functools.partial(
        _drop_stripes_kernel, stripes_num=stripes_num, l_blk=l_blk
    )

    out2 = pl.pallas_call(
        kernel,
        out_shape=jax.ShapeDtypeStruct((B, R, L), x.dtype),
        grid_spec=pltpu.PrefetchScalarGridSpec(
            num_scalar_prefetch=2,
            grid=grid,
            in_specs=[
                pl.BlockSpec(
                    (1, r_blk, l_blk),
                    lambda n, r, l, starts_r, ends_r: (n, r, l),
                ),
            ],
            out_specs=pl.BlockSpec(
                (1, r_blk, l_blk),
                lambda n, r, l, starts_r, ends_r: (n, r, l),
            ),
        ),
        compiler_params=pltpu.CompilerParams(
            dimension_semantics=("parallel", "parallel", "parallel"),
            vmem_limit_bytes=32 * 1024 * 1024,
        ),
    )(starts, ends, x2)

    return out2.reshape(B, C, H, W)


def sample_stripe_params(key, batch_size, total_width, drop_width, stripes_num):
    """Replicates the torch.randint sampling in DropStripes.transform_slice."""
    kd, kb = jax.random.split(key)
    dist = jax.random.randint(
        kd, (batch_size, stripes_num), 0, drop_width, dtype=jnp.int32
    )
    # bgn ~ U[0, total_width - dist)  (dist < drop_width <= total_width, so >= 1)
    u = jax.random.uniform(kb, (batch_size, stripes_num), dtype=jnp.float32)
    bgn = jnp.floor(u * (total_width - dist).astype(jnp.float32)).astype(jnp.int32)
    return bgn, dist


def _reference(x, bgn, dist, dim):
    """Pure-JAX reference of the same masking, for verification."""
    B = x.shape[0]
    total = x.shape[dim]
    idx = jnp.arange(total, dtype=jnp.int32)
    out = x
    for n in range(B):
        keep = jnp.ones((total,), dtype=bool)
        for s in range(bgn.shape[1]):
            b, d = bgn[n, s], dist[n, s]
            keep = keep & ~((idx >= b) & (idx < b + d))
        if dim == 2:
            m = keep[None, :, None]
        else:
            m = keep[None, None, :]
        out = out.at[n].set(jnp.where(m, out[n], 0.0).astype(x.dtype))
    return out


if __name__ == "__main__":
    key = jax.random.PRNGKey(0)
    kx, ks2, ks3 = jax.random.split(key, 3)

    # Module config: drop_width=4, stripes_num=2 (time + freq masks)
    DROP_WIDTH, STRIPES_NUM = 4, 2
    B, C, H, W = 2, 4, 16, 16
    x = jax.random.normal(kx, (B, C, H, W), dtype=jnp.float32)

    ok = True

    # dim=2: drop stripes along H (time axis)
    bgn2, dist2 = sample_stripe_params(ks2, B, H, DROP_WIDTH, STRIPES_NUM)
    out2 = drop_stripes(x, bgn2, dist2, dim=2, stripes_num=STRIPES_NUM, training=True)
    out2 = jax.block_until_ready(out2)
    ref2 = _reference(x, bgn2, dist2, 2)
    ok &= bool(jnp.allclose(out2, ref2))
    ok &= out2.shape == x.shape and out2.dtype == x.dtype

    # dim=3: drop stripes along W (freq axis)
    bgn3, dist3 = sample_stripe_params(ks3, B, W, DROP_WIDTH, STRIPES_NUM)
    out3 = drop_stripes(x, bgn3, dist3, dim=3, stripes_num=STRIPES_NUM, training=True)
    out3 = jax.block_until_ready(out3)
    ref3 = _reference(x, bgn3, dist3, 3)
    ok &= bool(jnp.allclose(out3, ref3))

    # eval-mode path: identity
    out_eval = drop_stripes(
        x, bgn2, dist2, dim=2, stripes_num=STRIPES_NUM, training=False
    )
    ok &= bool(jnp.array_equal(out_eval, x))

    assert ok, "mismatch vs reference"
    print("KERNEL_OK")
</pallas_src>

<mosaic_0001>
module attributes {stable_mosaic.version = 11 : i64} {
  func.func @_drop_stripes_kernel(%arg0: i32, %arg1: i32, %arg2: i32, %arg3: memref<4xi32, #tpu.memory_space<smem>>, %arg4: memref<4xi32, #tpu.memory_space<smem>>, %arg5: memref<1x4x256xf32, #tpu.memory_space<vmem>>, %arg6: memref<1x4x256xf32, #tpu.memory_space<vmem>>) attributes {dimension_semantics = [#tpu.dimension_semantics<parallel>, #tpu.dimension_semantics<parallel>, #tpu.dimension_semantics<parallel>], iteration_bounds = array<i64: 2, 1, 1>, scalar_prefetch = 2 : i64, scratch_operands = 0 : i64, tpu.core_type = #tpu.core_type<tc>, window_params = [{transform_indices = @transform_0, window_bounds = array<i64: 1, 4, 256>}, {transform_indices = @transform_1, window_bounds = array<i64: 1, 4, 256>}]} {
    %c0 = arith.constant 0 : index
    %c0_0 = arith.constant 0 : index
    %c0_1 = arith.constant 0 : index
    %0 = vector.load %arg5[%c0, %c0_0, %c0_1] : memref<1x4x256xf32, #tpu.memory_space<vmem>>, vector<1x4x256xf32>
    %c256_i32 = arith.constant 256 : i32
    %1 = arith.muli %arg2, %c256_i32 : i32
    %2 = tpu.iota {dimensions = array<i32: 2>} : vector<1x1x256xi32>
    %3 = vector.broadcast %1 : i32 to vector<1x1x256xi32>
    %4 = arith.addi %3, %2 : vector<1x1x256xi32>
    %false = arith.constant false
    %5 = vector.broadcast %false : i1 to vector<1x1x256xi1>
    %c2_i32 = arith.constant 2 : i32
    %6 = arith.muli %arg0, %c2_i32 : i32
    %c0_i32 = arith.constant 0 : i32
    %7 = arith.addi %6, %c0_i32 : i32
    %8 = arith.index_cast %7 : i32 to index
    %9 = memref.load %arg3[%8] : memref<4xi32, #tpu.memory_space<smem>>
    %c2_i32_2 = arith.constant 2 : i32
    %10 = arith.muli %arg0, %c2_i32_2 : i32
    %c0_i32_3 = arith.constant 0 : i32
    %11 = arith.addi %10, %c0_i32_3 : i32
    %12 = arith.index_cast %11 : i32 to index
    %13 = memref.load %arg4[%12] : memref<4xi32, #tpu.memory_space<smem>>
    %14 = vector.broadcast %9 : i32 to vector<1x1x256xi32>
    %15 = arith.cmpi sge, %4, %14 : vector<1x1x256xi32>
    %16 = vector.broadcast %13 : i32 to vector<1x1x256xi32>
    %17 = arith.cmpi slt, %4, %16 : vector<1x1x256xi32>
    %18 = arith.andi %15, %17 : vector<1x1x256xi1>
    %19 = arith.ori %5, %18 : vector<1x1x256xi1>
    %c2_i32_4 = arith.constant 2 : i32
    %20 = arith.muli %arg0, %c2_i32_4 : i32
    %c1_i32 = arith.constant 1 : i32
    %21 = arith.addi %20, %c1_i32 : i32
    %22 = arith.index_cast %21 : i32 to index
    %23 = memref.load %arg3[%22] : memref<4xi32, #tpu.memory_space<smem>>
    %c2_i32_5 = arith.constant 2 : i32
    %24 = arith.muli %arg0, %c2_i32_5 : i32
    %c1_i32_6 = arith.constant 1 : i32
    %25 = arith.addi %24, %c1_i32_6 : i32
    %26 = arith.index_cast %25 : i32 to index
    %27 = memref.load %arg4[%26] : memref<4xi32, #tpu.memory_space<smem>>
    %28 = vector.broadcast %23 : i32 to vector<1x1x256xi32>
    %29 = arith.cmpi sge, %4, %28 : vector<1x1x256xi32>
    %30 = vector.broadcast %27 : i32 to vector<1x1x256xi32>
    %31 = arith.cmpi slt, %4, %30 : vector<1x1x256xi32>
    %32 = arith.andi %29, %31 : vector<1x1x256xi1>
    %33 = arith.ori %19, %32 : vector<1x1x256xi1>
    %cst = arith.constant dense<true> : vector<1x1x256xi1>
    %34 = arith.xori %33, %cst : vector<1x1x256xi1>
    %cst_7 = arith.constant 0.000000e+00 : f32
    %35 = vector.shape_cast %34 : vector<1x1x256xi1> to vector<1x1x256xi1>
    %36 = vector.broadcast %35 : vector<1x1x256xi1> to vector<1x4x256xi1>
    %37 = vector.broadcast %cst_7 : f32 to vector<1x4x256xf32>
    %38 = arith.select %36, %0, %37 : vector<1x4x256xi1>, vector<1x4x256xf32>
    %c0_8 = arith.constant 0 : index
    %c0_9 = arith.constant 0 : index
    %c0_10 = arith.constant 0 : index
    %39 = vector.load %arg6[%c0_8, %c0_9, %c0_10] : memref<1x4x256xf32, #tpu.memory_space<vmem>>, vector<1x4x256xf32>
    tpu.vector_store %arg6[%c0_8, %c0_9, %c0_10], %38 {strides = array<i32>} : memref<1x4x256xf32, #tpu.memory_space<vmem>>, vector<1x4x256xf32>,
    return
  }
  func.func @transform_0(%arg0: i32, %arg1: i32, %arg2: i32, %arg3: memref<4xi32, #tpu.memory_space<smem>>, %arg4: memref<4xi32, #tpu.memory_space<smem>>) -> (i32, i32, i32) {
    %c0_i32 = arith.constant 0 : i32
    return %arg0, %arg1, %arg2 : i32, i32, i32
  }
  func.func @transform_1(%arg0: i32, %arg1: i32, %arg2: i32, %arg3: memref<4xi32, #tpu.memory_space<smem>>, %arg4: memref<4xi32, #tpu.memory_space<smem>>) -> (i32, i32, i32) {
    %c0_i32 = arith.constant 0 : i32
    return %arg0, %arg1, %arg2 : i32, i32, i32
  }
}

</mosaic_0001>

<bundles_post_ra>
// kernel: tpu_custom_call.1
= control target key start
LH: loop header
LB: loop body
LE: loop exit
PB: predicated region body
PF: predicated region fallthrough
CT: control target
= control target key end

     0   :  { %s791_s0 = inlined_call_operand.hbm [shape: s32[4], index: 0, kind: input, shape index: {}]   ;;  %s792_s2 = inlined_call_operand.hbm [shape: f32[2,4,256], index: 2, kind: input, shape index: {}]   ;;  %s793_s3 = inlined_call_operand.hbm [shape: f32[2,4,256], index: 3, kind: output, shape index: {}]   ;;  %s794_s1 = inlined_call_operand.vmem [shape: s32[4], index: 1, kind: input, shape index: {}]  }
   0x1   :  { %s418_s14 = scalar_lea.hbm %s791_s0, 16 }
   0x2   :  { %p419_p0 = scmp.ne.s32.totalorder %s791_s0, %s418_s14  ;;  %p422_p1 = scmp.lt.u32.totalorder %s418_s14, %s791_s0 }
   0x4   :  { %p424_p2 = pnand %p422_p1, %p419_p0 }
   0x6   :  { %427 = shalt.err (!%p424_p2)  }
   0x7   :  { %s556_s19 = smov [#allocation3]   ;;  %s10_s24 = sshll.u32 %s794_s1, 4  ;;  %s11_s24 = int_to_ptr.vmem [resolvable:$true] %s10_s24 }
   0x8   :  { %9 = dma.hbm_to_smem %s791_s0, 16, %s556_s19, [#allocation2] }
   0x9   :  { %s428_s25 = scalar_lea.vmem %s11_s24, 16  ;;  %p433_p4 = scmp.lt.s32.totalorder %s11_s24, %s11_s24 }
   0xa   :  { %p429_p3 = scmp.ne.s32.totalorder %s11_s24, %s428_s25  ;;  %p434_p5 = scmp.lt.s32.totalorder %s428_s25, %s428_s25 }
   0xc   :  { %p435_p6 = por %p434_p5, %p433_p4 }
   0xe   :  { %p436_p7 = pnand %p435_p6, %p429_p3 }
  0x10   :  { %439 = shalt.err (!%p436_p7)  }
  0x11   :  { %s557_s26 = smov [#allocation4]  }
  0x12   :  { %13 = dma.vmem_to_smem %s11_s24, 16, %s557_s26, [#allocation2] }
  0x13   :  { %522 = dma.done.wait [#allocation2], 32 }
  0x14   :  { %523 = vsyncadd [#allocation2], 4294967264 }
  0x15   :  { %15 = sfence }
  0x16   :  { %16 = vsyncpa [#allocation6], 0 }
  0x17   :  { %18 = vsyncpa [#allocation6 + $0x1], 0 }
  0x18   :  { %19 = vsyncpa [#allocation7], 0 }
  0x19   :  { %21 = vsyncpa [#allocation7 + $0x1], 0  ;;  %s596_s0 = smov 0   ;;  %s598_s1 = smov 0  }
  0x1a   :  { %s600_s27 = smov 0   ;;  %s602_s28 = smov 0  }
  0x1b   :  { %s604_s29 = smov 0   ;;  %s606_s30 = smov 0  }
  0x1c LB: > { %s334_s4 = sadd.s32 4294967295, %s554_s30   ;;  %s335_s5 = sadd.s32 4294967294, %s554_s30   ;;  %s554_s30 = sphi %s606_s30, %s27_s30   ;;  %s550_s29 = sphi %s604_s29, %s816_s29   ;;  %s546_s28 = sphi %s602_s28, %s815_s28   ;;  %s542_s27 = sphi %s600_s27, %s814_s27   ;;  %s538_s1 = sphi %s598_s1, %s813_s1   ;;  %s534_s0 = sphi %s596_s0, %s812_s0  }
  0x1d   : > { %s46_s6 = sadd.s32 1, %s550_s29  ;;  %s57_s7 = sadd.s32 1, %s542_s27 }
  0x1e   : > { %p48_p8 = scmp.ge.s32.totalorder %s46_s6, 2  ;;  %p64_p9 = scmp.ne.s32.totalorder %s542_s27, %s538_s1 }
  0x1f   : > { %p65_p10 = scmp.eq.s32.totalorder %s554_s30, 0  ;;  %p70_p11 = scmp.ne.s32.totalorder %s538_s1, %s534_s0 }
  0x20   : > { %s818_s6 = smov (%p48_p8, %s46_s6), 0  ;;  %p71_p13 = scmp.eq.s32.totalorder %s334_s4, 0 }
  0x21   : > { %p637_p12 = por %p65_p10, %p64_p9  ;;  %s50_s9 = ssub.s32 %s550_s29, %s818_s6 }
  0x22   : > { %p98_p0 = scmp.eq.s32.totalorder %s334_s4, 1  ;;  %p55_p1 = scmp.eq.s32.totalorder %s50_s9, 0 }
  0x23   : > { %p643_p2 = por %p71_p13, %p70_p11  ;;  %p104_p4 = scmp.eq.s32.totalorder %s335_s5, 1 }
  0x24   : > { %p647_p3 = por %p98_p0, %p64_p9  ;;  %p364_p7 = scmp.lt.s32.totalorder %s554_s30, 2 }
  0x25   : > { %s652_s12 = scalar_select %p55_p1, %s542_s27, %s57_s7  }
  0x26   : > { %s798_s11 = scalar_select %p647_p3, 1, 0 }
  0x27   : > { %p654_p5 = por %p104_p4, %p70_p11  ;;  %s124_s14 = sand.u32 1, %s542_s27  }
  0x28   : > { %s338_s15 = sshll.u32 %s124_s14, 3  ;;  %s350_s16 = sshll.u32 %s550_s29, 7 }
  0x29   : > { %s799_s13 = scalar_select %p654_p5, 1, 0 }
  0x2a   : > { %s665_s19 = scalar_lea.hbm %s792_s2, %s350_s16  ;;  %s128_s20 = scalar_lea.vmem [#allocation5], %s338_s15 }
  0x2b   : > { %s140_s21 = sshll.u32 %s128_s20, 4  ;;  %p671_p8 = pnand %p364_p7, %p637_p12  ;;  %s667_s21 = int_to_ptr.vmem [resolvable:$true] %s140_s21 }
  0x2c   : > { %s125_s23 = scalar_lea.sflag [#allocation6], %s124_s14  ;;  %s440_s24 = scalar_lea.hbm %s665_s19, 128 }
  0x2d   : > { %p441_p11 = scmp.ne.s32.totalorder %s665_s19, %s440_s24  ;;  %p442_p13 = pneg %p671_p8 }
  0x2e   : > { %s445_s4 = scalar_lea.hbm %s792_s2, 256  ;;  %p446_p12 = scmp.lt.u32.totalorder %s665_s19, %s792_s2 }
  0x2f   : > { %p443_p0 = pnand %p442_p13, %p441_p11  ;;  %p447_p4 = scmp.lt.u32.totalorder %s445_s4, %s440_s24 }
  0x30   : > { %p449_p6 = scmp.lt.u32.totalorder %s440_s24, %s665_s19 }
  0x31   : > { %p444_p1 = pneg %p443_p0  ;;  %p448_p7 = por %p447_p4, %p446_p12 }
  0x33   : > { %p450_p9 = por %p449_p6, %p448_p7 }
  0x35   : > { %p451_p10 = pnand %p450_p9, %p444_p1 }
  0x37   : > { %454 = shalt.err (!%p451_p10)
}
  0x38   : > { %s455_s8 = scalar_lea.vmem %s667_s21, 128  ;;  %s558_s9 = smov [#allocation5]  }
  0x39   : > { %p456_p11 = scmp.ne.s32.totalorder %s667_s21, %s455_s8  ;;  %s460_s14 = sshll.u32 %s558_s9, 4  ;;  %s461_s14 = int_to_ptr.vmem [resolvable:$false] %s460_s14 }
  0x3a   : > { %s462_s15 = scalar_lea.vmem %s461_s14, 256  ;;  %p463_p3 = scmp.lt.s32.totalorder %s667_s21, %s461_s14 }
  0x3b   : > { %p458_p0 = pnand %p456_p11, %p442_p13  ;;  %p464_p12 = scmp.lt.s32.totalorder %s462_s15, %s455_s8 }
  0x3d   : > { %p459_p5 = pneg %p458_p0  ;;  %p465_p4 = por %p464_p12, %p463_p3 }
  0x3f   : > { %p466_p6 = pnand %p465_p4, %p459_p5 }
  0x41   : > { %469 = shalt.err (!%p466_p6)
}
  0x42   : > { %359 = dma.hbm_to_vmem [thread:$0]  (!%p671_p8), %s665_s19, 128, %s667_s21, %s125_s23  }
  0x43   : > { %p801_p9 = scmp.lt.s32.totalorder %s554_s30, 3  ;;  %p802_p10 = scmp.ge.s32.totalorder %s554_s30, 1 }
  0x45   : > { %p146_p13 = pnand %p802_p10, %p801_p9 }
  0x46   : > { %s707_s16 = sand.u32 (!%p146_p13), 1, %s538_s1  }
  0x47   : > { %149 = sbr.rel (%p146_p13) target bundleno = 114 (0x72), region = 24  ;;  %s342_s17 = sshll.u32 (!%p146_p13), %s707_s16, 3 }
  0x48   : > { %s152_s18 = scalar_lea.sflag (!%p146_p13), [#allocation6], %s707_s16  ;;  %s155_s20 = scalar_lea.vmem (!%p146_p13), [#allocation5], %s342_s17 }
  0x4e   : > { %525 = dma.done.wait (%p643_p2), %s152_s18, 128  }
  0x4f   : > { %527 = vsyncadd (%p643_p2), %s152_s18, 4294967168  ;;  %v178_v0 = vlaneseq  ;;  %s344_s19 = sshll.u32 %s546_s28, 1  ;;  %v176_v10 = vld [vmem:[%s155_s20] sm:$0xff]  ;;  %s173_s10 = scalar_lea.vmem [#allocation8], %s342_s17  ;;  %vm559_vm14 = vmmov 1  }
  0x50   : > { %s185_s21 = sld [smem:[#allocation3 + %s344_s19]]  ;;  %s195_s23 = sadd.s32 1, %s344_s19  ;;  %v215_v11 = vcombine.high %v176_v10, %v176_v10 }
  0x51   : > { %s186_s22 = sld [smem:[#allocation4 + %s344_s19]]  ;;  %v179_v1 = vand.u32 127, %v178_v0  ;;  %s243_s26 = sshll.u32 %s173_s10, 4  ;;  %s739_s26 = int_to_ptr.vmem [resolvable:$true] %s243_s26 }
  0x52   : > { %s196_s24 = sld [smem:[#allocation3 + %s195_s23]]  ;;  %s351_s4 = sshll.u32 %s546_s28, 7 }
  0x53   : > { %s197_s25 = sld [smem:[#allocation4 + %s195_s23]]  ;;  %v180_v2 = vadd.s32 128, %v179_v1  ;;  %s744_s8 = scalar_lea.hbm %s793_s3, %s351_s4 }
  0x54   : > { %s225_s9 = scalar_lea.sflag [#allocation7], %s707_s16  ;;  %s470_s14 = scalar_lea.vmem %s739_s26, 128 }
  0x55   : > { %p471_p2 = scmp.ne.s32.totalorder %s739_s26, %s470_s14  ;;  %p809_p3 = scmp.ne.s32.totalorder %s798_s11, 0 }
  0x56   : > { %v187_v3 = vstv %s185_s21  ;;  %s560_s28 = smov [#allocation8]  }
  0x57   : > { %v190_v4 = vstv %s186_s22  ;;  %vm718_vm0 = vcmp.ge.s32.totalorder %v179_v1, %v187_v3  ;;  %vm722_vm1 = vcmp.ge.s32.totalorder %v180_v2, %v187_v3  ;;  %p472_p5 = pnand %p471_p2, %p809_p3  ;;  %s474_s15 = sshll.u32 %s560_s28, 4  ;;  %s475_s15 = int_to_ptr.vmem [resolvable:$false] %s474_s15 }
  0x58   : > { %vm191_vm2 = vcmp.lt.s32.totalorder %v179_v1, %v190_v4  ;;  %vm726_vm3 = vcmp.lt.s32.totalorder %v180_v2, %v190_v4  ;;  %v198_v8 = vstv %s196_s24  ;;  %s476_s17 = scalar_lea.vmem %s475_s15, 256  ;;  %p477_p1 = scmp.lt.s32.totalorder %s739_s26, %s475_s15 }
  0x59   : > { %vm193_vm4 = vmand %vm718_vm0, %vm191_vm2  ;;  %v201_v9 = vstv %s197_s25  ;;  %vm199_vm6 = vcmp.ge.s32.totalorder %v179_v1, %v198_v8  ;;  %vm200_vm7 = vcmp.ge.s32.totalorder %v180_v2, %v198_v8  ;;  %p473_p8 = pneg %p472_p5  ;;  %p478_p7 = scmp.lt.s32.totalorder %s476_s17, %s470_s14 }
  0x5a   : > { %vm194_vm5 = vmand %vm722_vm1, %vm726_vm3  ;;  %vm202_vm8 = vcmp.lt.s32.totalorder %v179_v1, %v201_v9  ;;  %vm203_vm9 = vcmp.lt.s32.totalorder %v180_v2, %v201_v9 }
  0x5b   : > { %vm204_vm10 = vmand %vm199_vm6, %vm202_vm8  ;;  %p479_p11 = por %p478_p7, %p477_p1 }
  0x5c   : > { %vm205_vm11 = vmand %vm200_vm7, %vm203_vm9 }
  0x5d   : > { %vm206_vm12 = vmor %vm193_vm4, %vm204_vm10  ;;  %p480_p0 = pnand %p479_p11, %p473_p8 }
  0x5e   : > { %vm207_vm13 = vmor %vm194_vm5, %vm205_vm11 }
  0x5f   : > { %vm208_vm15 = vmxor %vm206_vm12, %vm559_vm14 }
  0x60   : > { %vm209_vm0 = vmxor %vm207_vm13, %vm559_vm14  ;;  %v217_v12 = vsel %vm208_vm15, %v176_v10, 0.0 }
  0x61   : > { %v218_v13 = vsel %vm209_vm0, %v215_v11, 0.0 }
  0x62   : > { %v221_v14 = vcombine.low %v217_v12, %v218_v13 }
  0x64   : > { %223 = vst [vmem:[%s173_s10] sm:$0xff] %v221_v14 }
  0x65   : > { %483 = shalt.err (!%p480_p0)
}
  0x66   : > { %s484_s16 = scalar_lea.hbm %s744_s8, 128  ;;  %s488_s19 = scalar_lea.hbm %s793_s3, 256 }
  0x67   : > { %p485_p12 = scmp.ne.s32.totalorder %s744_s8, %s484_s16  ;;  %p489_p9 = scmp.lt.u32.totalorder %s744_s8, %s793_s3 }
  0x68   : > { %p490_p10 = scmp.lt.u32.totalorder %s488_s19, %s484_s16  ;;  %p492_p2 = scmp.lt.u32.totalorder %s484_s16, %s744_s8 }
  0x69   : > { %p486_p4 = pnand %p485_p12, %p809_p3 }
  0x6a   : > { %p491_p13 = por %p490_p10, %p489_p9 }
  0x6b   : > { %p487_p6 = pneg %p486_p4 }
  0x6c   : > { %p493_p5 = por %p492_p2, %p491_p13 }
  0x6e   : > { %p494_p8 = pnand %p493_p5, %p487_p6 }
  0x70   : > { %497 = shalt.err (!%p494_p8)
}
  0x71   : > { %354 = dma.vmem_to_hbm [thread:$0]  (%p809_p3), %s739_s26, 128, %s744_s8, %s225_s9  }
  0x72 PF: > { %s255_s23 = sand.u32 1, %s534_s0   ;;  %p810_p1 = scmp.ne.s32.totalorder %s799_s13, 0 }
  0x73   : > { %p811_p7 = scmp.ge.s32.totalorder %s554_s30, 2  ;;  %s256_s24 = scalar_lea.sflag [#allocation7], %s255_s23 }
  0x75   : > { %p361_p11 = pnand %p811_p7, %p810_p1 }
  0x77   : > { %529 = dma.done.wait (!%p361_p11), %s256_s24, 128  }
  0x78   : > { %531 = vsyncadd (!%p361_p11), %s256_s24, 4294967168  ;;  %s27_s30 = sadd.s32 1, %s554_s30   ;;  %s812_s0 = smov %s538_s1 }
  0x79   : > { %p24_p0 = scmp.ge.s32.totalorder %s27_s30, 4   ;;  %s813_s1 = smov %s542_s27 }
  0x7a   : > { %s814_s27 = smov %s652_s12  ;;  %s815_s28 = smov %s550_s29 }
  0x7b   : > { %s816_s29 = smov %s818_s6  ;;  %26 = sbr.rel (!%p24_p0) target bundleno = 28 (0x1c), region = 69 }
  0x82   :  { %261 = vsyncpa [#allocation6], 1 }
  0x83   :  { %263 = vsyncpa [#allocation6 + $0x1], 1 }
  0x84   :  { %264 = vsyncpa [#allocation7], 1 }
  0x85   :  { %266 = vsyncpa [#allocation7 + $0x1], 1 }

</bundles_post_ra>
